<compile_context>
chip_gen: v7x
topology: tpu7x:2x2x1
jax: 0.10.0
libtpu: 0.0.40
codegen_flags: <defaults>
</compile_context>

<pallas_src>
import jax
import jax.numpy as jnp
from jax import lax
from jax.experimental import pallas as pl
from jax.experimental.pallas import tpu as pltpu


def _round_up(x, m):
    return ((x + m - 1) // m) * m


def _vmem_capacity_bytes():
    try:
        cap = int(getattr(pltpu.get_tpu_info(), "vmem_capacity_bytes", 0))
        if cap > 0:
            return cap
    except Exception:
        pass
    return 64 << 20  # conservative default (v7x per-core VMEM)


def _choose_tile(h, itemsize, vmem_bytes):
    """Tile width along the pooler-output / classifier-contraction dim.

    Largest multiple of 128 dividing H, capped so the double-buffered Wp^T
    tile stream stays within ~half of VMEM (max 32 MiB) and <= 2048 lanes.
    Falls back to a single full-H tile when H is not a multiple of 128.
    """
    if h % 128 != 0:
        return h
    budget = min(vmem_bytes // 2, 32 << 20)
    tn_max = max(128, budget // (2 * h * itemsize))
    tn = 128
    cand = 128
    while cand <= min(h, 2048):
        if h % cand == 0 and cand <= tn_max:
            tn = cand
        cand += 128
    return tn


def _albert_highway_kernel(x_ref, wpt_ref, bp_ref, wct_ref,
                           part_ref, pooled_ref):
    # x_ref:      [B_pad, H]        CLS hidden states (resident, compute dtype)
    # wpt_ref:    [H, TN]           pooler weight tile, pre-transposed (Wp^T)
    # bp_ref:     [1, TN]           pooler bias tile (f32)
    # wct_ref:    [TN, L_pad]       classifier weight tile, pre-transposed (Wc^T)
    # part_ref:   [1, B_pad, L_pad] per-core partial logits, f32, resident
    #                               across the inner (arbitrary) grid axis
    # pooled_ref: [B_pad, TN]       pooled-output tile (output dtype)
    n = pl.program_id(1)

    @pl.when(n == 0)
    def _init():
        part_ref[...] = jnp.zeros_like(part_ref)

    # Pooler tile: x @ Wp^T[:, tile] on the MXU, f32 accumulation, f32 tanh.
    pre = jnp.dot(x_ref[...], wpt_ref[...], preferred_element_type=jnp.float32)
    pooled = jnp.tanh(pre + bp_ref[...])

    # TODO(synk): training-mode dropout (pltpu.prng_*) not implemented; the
    # kernel matches eval mode where dropout is identity.
    pooled_ref[...] = pooled.astype(pooled_ref.dtype)

    # Classifier partial: this TN slice of pooled @ matching TN rows of Wc^T,
    # accumulated in the resident f32 output block.
    contrib = jnp.dot(pooled.astype(wct_ref.dtype), wct_ref[...],
                      preferred_element_type=jnp.float32)
    part_ref[...] += contrib[None]


def albert_highway(encoder_hidden_states, pooler_w, pooler_b,
                   classifier_w, classifier_b,
                   *, compute_dtype=jnp.bfloat16, tile_n=None):
    """AlbertHighway forward (eval mode).

    encoder_hidden_states: [B, S, H]; weights in native PyTorch [out, in]
    layout.  Returns (logits [B, L], pooled [B, H]) in the input dtype.
    """
    B, S, H = encoder_hidden_states.shape
    L = classifier_w.shape[0]
    out_dtype = encoder_hidden_states.dtype
    compute_dtype = jnp.dtype(compute_dtype)
    c_item = compute_dtype.itemsize

    x_cls = encoder_hidden_states[:, 0, :].astype(compute_dtype)   # [B, H]

    # Pad batch to the sublane granule and labels to 128 lanes so MXU passes
    # and stores are dense; padding is stripped after the call.
    B_pad = _round_up(B, 8)
    L_pad = _round_up(L, 128)
    if B_pad != B:
        x_cls = jnp.zeros((B_pad, H), compute_dtype).at[:B].set(x_cls)

    # Pre-transpose weights (fused with the dtype cast; one-time / trace-time
    # cost for inference constants) so both in-kernel dots are plain
    # ((1,),(0,)) MXU matmuls with no streamed-tile XLU transposes.
    wp_t = pooler_w.T.astype(compute_dtype)                         # [H, H]
    wc_t = (jnp.zeros((H, L_pad), compute_dtype)
            .at[:, :L].set(classifier_w.T.astype(compute_dtype)))   # [H, L_pad]
    bp2 = pooler_b.astype(jnp.float32).reshape(1, H)

    vmem_cap = _vmem_capacity_bytes()
    tn = int(tile_n) if tile_n is not None else _choose_tile(H, c_item, vmem_cap)
    assert H % tn == 0, "tile_n must divide the hidden size"
    n_tiles = H // tn

    # Split the H-tile stream across v7x's two TensorCores when possible
    # (sequential and harmless on single-core v5e/v6e).
    n_split = 2 if (n_tiles >= 2 and n_tiles % 2 == 0) else 1
    n_inner = n_tiles // n_split

    # Rough VMEM need: double-buffered streamed tiles + residents, with headroom.
    est_vmem = (2 * (tn * H + tn * L_pad + tn) * c_item          # Wp^T, Wc^T, bp tiles
                + B_pad * H * c_item                              # resident x_cls
                + 2 * B_pad * tn * jnp.dtype(out_dtype).itemsize  # pooled tiles
                + n_split * B_pad * L_pad * 4)                    # partial logits
    vmem_limit = int(min(vmem_cap - (4 << 20), max(32 << 20, 2 * est_vmem)))

    flops = 2 * B_pad * H * H + 2 * B_pad * H * L_pad
    bytes_accessed = (H * H * c_item + H * L_pad * c_item
                      + B_pad * H * c_item + 4 * H
                      + B_pad * H * jnp.dtype(out_dtype).itemsize
                      + n_split * B_pad * L_pad * 4)

    part, pooled = pl.pallas_call(
        _albert_highway_kernel,
        out_shape=(
            jax.ShapeDtypeStruct((n_split, B_pad, L_pad), jnp.float32),  # partial logits
            jax.ShapeDtypeStruct((B_pad, H), out_dtype),                 # pooled (padded)
        ),
        grid_spec=pltpu.PrefetchScalarGridSpec(
            num_scalar_prefetch=0,
            grid=(n_split, n_inner),
            in_specs=[
                pl.BlockSpec((B_pad, H), lambda c, n: (0, 0)),                 # x_cls (resident)
                pl.BlockSpec((H, tn), lambda c, n: (0, c * n_inner + n)),      # Wp^T tile
                pl.BlockSpec((1, tn), lambda c, n: (0, c * n_inner + n)),      # bp tile
                pl.BlockSpec((tn, L_pad), lambda c, n: (c * n_inner + n, 0)),  # Wc^T tile
            ],
            out_specs=[
                pl.BlockSpec((1, B_pad, L_pad), lambda c, n: (c, 0, 0)),       # partial logits
                pl.BlockSpec((B_pad, tn), lambda c, n: (0, c * n_inner + n)),  # pooled tile
            ],
        ),
        compiler_params=pltpu.CompilerParams(
            dimension_semantics=("parallel", "arbitrary"),
            vmem_limit_bytes=vmem_limit,
        ),
        cost_estimate=pl.CostEstimate(
            flops=flops,
            transcendentals=B_pad * H,
            bytes_accessed=bytes_accessed),
    )(x_cls, wp_t, bp2, wc_t)

    logits = (part.sum(axis=0)[:B, :L]
              + classifier_b.astype(jnp.float32)[None, :]).astype(out_dtype)
    return logits, pooled[:B, :]


def _reference(encoder_hidden_states, pooler_w, pooler_b,
               classifier_w, classifier_b, cast_dtype=None):
    x_cls = encoder_hidden_states[:, 0, :]
    if cast_dtype is not None:
        x_cls = x_cls.astype(cast_dtype)
        pooler_w = pooler_w.astype(cast_dtype)
        classifier_w = classifier_w.astype(cast_dtype)
    pooled = jnp.tanh(
        jnp.dot(x_cls, pooler_w.T, precision=lax.Precision.HIGHEST,
                preferred_element_type=jnp.float32) + pooler_b)
    pooled2 = pooled.astype(cast_dtype) if cast_dtype is not None else pooled
    logits = (jnp.dot(pooled2, classifier_w.T, precision=lax.Precision.HIGHEST,
                      preferred_element_type=jnp.float32) + classifier_b)
    return logits, pooled


def _make_case(B, S, H, L, key):
    k_x, k_wp, k_bp, k_wc, k_bc = jax.random.split(key, 5)
    hidden_states = jax.random.normal(k_x, (B, S, H), dtype=jnp.float32)
    pooler_w = jax.random.normal(k_wp, (H, H), dtype=jnp.float32) * 0.02
    pooler_b = jax.random.normal(k_bp, (H,), dtype=jnp.float32) * 0.02
    classifier_w = jax.random.normal(k_wc, (L, H), dtype=jnp.float32) * 0.02
    classifier_b = jax.random.normal(k_bc, (L,), dtype=jnp.float32) * 0.02
    return hidden_states, pooler_w, pooler_b, classifier_w, classifier_b


if __name__ == "__main__":
    key = jax.random.PRNGKey(0)
    key1, key2, key3 = jax.random.split(key, 3)

    # Case 1: tiny config, single full-H tile, f32 compute path (exact check).
    B, S, H, L = 2, 8, 32, 2
    args = _make_case(B, S, H, L, key1)
    logits, pooled = albert_highway(*args, compute_dtype=jnp.float32)
    jax.block_until_ready((logits, pooled))
    ref_logits, ref_pooled = _reference(*args)
    assert logits.shape == (B, L) and pooled.shape == (B, H)
    assert jnp.allclose(logits, ref_logits, atol=1e-4, rtol=1e-4)
    assert jnp.allclose(pooled, ref_pooled, atol=1e-4, rtol=1e-4)

    # Case 2: H=512 forced to 4 tiles of 128 -> 2-way core split (grid (2,2)),
    # default bf16 compute path; compared against a bf16-weight reference.
    B, S, H, L = 2, 4, 512, 3
    args = _make_case(B, S, H, L, key2)
    logits, pooled = albert_highway(*args, tile_n=128)
    jax.block_until_ready((logits, pooled))
    ref_logits, ref_pooled = _reference(*args, cast_dtype=jnp.bfloat16)
    assert logits.shape == (B, L) and pooled.shape == (B, H)
    assert jnp.allclose(logits, ref_logits, atol=1e-2, rtol=1e-2)
    assert jnp.allclose(pooled, ref_pooled, atol=1e-2, rtol=1e-2)

    # Case 3: odd batch (padding), f32 compute, 2 tiles split across the
    # parallel axis (grid (2,1)) -> exercises the wrapper-side partial sum.
    B, S, H, L = 3, 2, 512, 5
    args = _make_case(B, S, H, L, key3)
    logits, pooled = albert_highway(*args, compute_dtype=jnp.float32, tile_n=256)
    jax.block_until_ready((logits, pooled))
    ref_logits, ref_pooled = _reference(*args)
    assert logits.shape == (B, L) and pooled.shape == (B, H)
    assert jnp.allclose(logits, ref_logits, atol=1e-3, rtol=1e-3)
    assert jnp.allclose(pooled, ref_pooled, atol=1e-3, rtol=1e-3)

    print("KERNEL_OK")
</pallas_src>

<mosaic_0001>
module attributes {stable_mosaic.version = 11 : i64} {
  func.func @_albert_highway_kernel(%arg0: i32, %arg1: i32, %arg2: memref<8x32xf32, #tpu.memory_space<vmem>>, %arg3: memref<32x32xf32, #tpu.memory_space<vmem>>, %arg4: memref<1x32xf32, #tpu.memory_space<vmem>>, %arg5: memref<32x128xf32, #tpu.memory_space<vmem>>, %arg6: memref<1x8x128xf32, #tpu.memory_space<vmem>>, %arg7: memref<8x32xf32, #tpu.memory_space<vmem>>) attributes {dimension_semantics = [#tpu.dimension_semantics<parallel>, #tpu.dimension_semantics<arbitrary>], iteration_bounds = array<i64: 1, 1>, scalar_prefetch = 0 : i64, scratch_operands = 0 : i64, tpu.core_type = #tpu.core_type<tc>, window_params = [{pipeline_mode = #tpu.pipeline_mode<synchronous>, transform_indices = @transform_0, window_bounds = array<i64: 8, 32>}, {transform_indices = @transform_1, window_bounds = array<i64: 32, 32>}, {transform_indices = @transform_2, window_bounds = array<i64: 1, 32>}, {transform_indices = @transform_3, window_bounds = array<i64: 32, 128>}, {transform_indices = @transform_4, window_bounds = array<i64: 1, 8, 128>}, {transform_indices = @transform_5, window_bounds = array<i64: 8, 32>}]} {
    %c0_i32 = arith.constant 0 : i32
    %0 = arith.cmpi eq, %arg1, %c0_i32 : i32
    %1 = arith.extui %0 : i1 to i32
    %c0_i32_0 = arith.constant 0 : i32
    %2 = arith.cmpi ne, %1, %c0_i32_0 : i32
    scf.if %2 {
      %cst_17 = arith.constant 0.000000e+00 : f32
      %17 = vector.broadcast %cst_17 : f32 to vector<1x8x128xf32>
      %c0_18 = arith.constant 0 : index
      %c0_19 = arith.constant 0 : index
      %c0_20 = arith.constant 0 : index
      %18 = vector.load %arg6[%c0_18, %c0_19, %c0_20] : memref<1x8x128xf32, #tpu.memory_space<vmem>>, vector<1x8x128xf32>
      tpu.vector_store %arg6[%c0_18, %c0_19, %c0_20], %17 {strides = array<i32>} : memref<1x8x128xf32, #tpu.memory_space<vmem>>, vector<1x8x128xf32>,
    } else {
    }
    %c0 = arith.constant 0 : index
    %c0_1 = arith.constant 0 : index
    %3 = vector.load %arg2[%c0, %c0_1] : memref<8x32xf32, #tpu.memory_space<vmem>>, vector<8x32xf32>
    %c0_2 = arith.constant 0 : index
    %c0_3 = arith.constant 0 : index
    %4 = vector.load %arg3[%c0_2, %c0_3] : memref<32x32xf32, #tpu.memory_space<vmem>>, vector<32x32xf32>
    %cst = arith.constant dense<0.000000e+00> : vector<8x32xf32>
    %5 = tpu.matmul %3, %4, %cst {dimension_numbers = #tpu.dot_dimension_numbers<[1], [0], [0], [1], [0, 0, 1, 1], [], []>} : vector<8x32xf32>, vector<32x32xf32>, vector<8x32xf32> -> vector<8x32xf32>
    %c0_4 = arith.constant 0 : index
    %c0_5 = arith.constant 0 : index
    %6 = vector.load %arg4[%c0_4, %c0_5] : memref<1x32xf32, #tpu.memory_space<vmem>>, vector<1x32xf32>
    %7 = vector.broadcast %6 : vector<1x32xf32> to vector<8x32xf32>
    %8 = arith.addf %5, %7 : vector<8x32xf32>
    %9 = math.tanh %8 : vector<8x32xf32>
    %c0_6 = arith.constant 0 : index
    %c0_7 = arith.constant 0 : index
    %10 = vector.load %arg7[%c0_6, %c0_7] : memref<8x32xf32, #tpu.memory_space<vmem>>, vector<8x32xf32>
    tpu.vector_store %arg7[%c0_6, %c0_7], %9 {strides = array<i32>} : memref<8x32xf32, #tpu.memory_space<vmem>>, vector<8x32xf32>,
    %c0_8 = arith.constant 0 : index
    %c0_9 = arith.constant 0 : index
    %11 = vector.load %arg5[%c0_8, %c0_9] : memref<32x128xf32, #tpu.memory_space<vmem>>, vector<32x128xf32>
    %cst_10 = arith.constant dense<0.000000e+00> : vector<8x128xf32>
    %12 = tpu.matmul %9, %11, %cst_10 {dimension_numbers = #tpu.dot_dimension_numbers<[1], [0], [0], [1], [0, 0, 1, 1], [], []>} : vector<8x32xf32>, vector<32x128xf32>, vector<8x128xf32> -> vector<8x128xf32>
    %c0_11 = arith.constant 0 : index
    %c0_12 = arith.constant 0 : index
    %c0_13 = arith.constant 0 : index
    %13 = vector.load %arg6[%c0_11, %c0_12, %c0_13] : memref<1x8x128xf32, #tpu.memory_space<vmem>>, vector<1x8x128xf32>
    %14 = vector.shape_cast %12 : vector<8x128xf32> to vector<1x8x128xf32>
    %15 = arith.addf %13, %14 : vector<1x8x128xf32>
    %c0_14 = arith.constant 0 : index
    %c0_15 = arith.constant 0 : index
    %c0_16 = arith.constant 0 : index
    %16 = vector.load %arg6[%c0_14, %c0_15, %c0_16] : memref<1x8x128xf32, #tpu.memory_space<vmem>>, vector<1x8x128xf32>
    tpu.vector_store %arg6[%c0_14, %c0_15, %c0_16], %15 {strides = array<i32>} : memref<1x8x128xf32, #tpu.memory_space<vmem>>, vector<1x8x128xf32>,
    return
  }
  func.func @transform_0(%arg0: i32, %arg1: i32) -> (i32, i32) {
    %c0_i32 = arith.constant 0 : i32
    %c0_i32_0 = arith.constant 0 : i32
    %c0_i32_1 = arith.constant 0 : i32
    return %c0_i32, %c0_i32_0 : i32, i32
  }
  func.func @transform_1(%arg0: i32, %arg1: i32) -> (i32, i32) {
    %c1_i32 = arith.constant 1 : i32
    %0 = arith.muli %arg0, %c1_i32 : i32
    %1 = arith.addi %0, %arg1 : i32
    %c0_i32 = arith.constant 0 : i32
    %c0_i32_0 = arith.constant 0 : i32
    return %c0_i32, %1 : i32, i32
  }
  func.func @transform_2(%arg0: i32, %arg1: i32) -> (i32, i32) {
    %c1_i32 = arith.constant 1 : i32
    %0 = arith.muli %arg0, %c1_i32 : i32
    %1 = arith.addi %0, %arg1 : i32
    %c0_i32 = arith.constant 0 : i32
    %c0_i32_0 = arith.constant 0 : i32
    return %c0_i32, %1 : i32, i32
  }
  func.func @transform_3(%arg0: i32, %arg1: i32) -> (i32, i32) {
    %c1_i32 = arith.constant 1 : i32
    %0 = arith.muli %arg0, %c1_i32 : i32
    %1 = arith.addi %0, %arg1 : i32
    %c0_i32 = arith.constant 0 : i32
    %c0_i32_0 = arith.constant 0 : i32
    return %1, %c0_i32 : i32, i32
  }
  func.func @transform_4(%arg0: i32, %arg1: i32) -> (i32, i32, i32) {
    %c0_i32 = arith.constant 0 : i32
    %c0_i32_0 = arith.constant 0 : i32
    %c0_i32_1 = arith.constant 0 : i32
    return %arg0, %c0_i32, %c0_i32_0 : i32, i32, i32
  }
  func.func @transform_5(%arg0: i32, %arg1: i32) -> (i32, i32) {
    %c1_i32 = arith.constant 1 : i32
    %0 = arith.muli %arg0, %c1_i32 : i32
    %1 = arith.addi %0, %arg1 : i32
    %c0_i32 = arith.constant 0 : i32
    %c0_i32_0 = arith.constant 0 : i32
    return %c0_i32, %1 : i32, i32
  }
}

</mosaic_0001>

<bundles_post_ra>
// kernel: tpu_custom_call.1
= control target key start
LH: loop header
LB: loop body
LE: loop exit
PB: predicated region body
PF: predicated region fallthrough
CT: control target
= control target key end

     0   :  { %11 = vsyncpa [#allocation3], 0  ;;  %s583_s0 = inlined_call_operand.hbm [shape: f32[8,32], index: 0, kind: input, shape index: {}]   ;;  %s584_s1 = inlined_call_operand.hbm [shape: f32[32,32], index: 1, kind: input, shape index: {}]   ;;  %s585_s2 = inlined_call_operand.vmem [shape: f32[1,32], index: 2, kind: input, shape index: {}]   ;;  %s586_s3 = inlined_call_operand.hbm [shape: f32[32,128], index: 3, kind: input, shape index: {}]   ;;  %s587_s4 = inlined_call_operand.hbm [shape: f32[1,8,128], index: 4, kind: output, shape index: {0}]   ;;  %s588_s5 = inlined_call_operand.hbm [shape: f32[8,32], index: 5, kind: output, shape index: {1}]  }
   0x1   :  { %12 = vsyncpa [#allocation6], 0 }
   0x2   :  { %13 = vsyncpa [#allocation4], 0 }
   0x3   :  { %14 = vsyncpa [#allocation10], 0  ;;  %s471_s18 = smov [#allocation5]   ;;  %s353_s22 = scalar_lea.hbm %s584_s1, 512 }
   0x4   :  { %s33_s19 = sshll.u32 %s471_s18, 4  ;;  %p354_p0 = scmp.ne.s32.totalorder %s584_s1, %s353_s22  ;;  %s34_s19 = int_to_ptr.vmem [resolvable:$true] %s33_s19 }
   0x5   :  { %p357_p1 = scmp.lt.u32.totalorder %s353_s22, %s584_s1 }
   0x7   :  { %p359_p2 = pnand %p357_p1, %p354_p0 }
   0x9   :  { %362 = shalt.err (!%p359_p2)
}
   0xa   :  { %s363_s27 = scalar_lea.vmem %s34_s19, 512  ;;  %p368_p4 = scmp.lt.s32.totalorder %s34_s19, %s34_s19 }
   0xb   :  { %p364_p3 = scmp.ne.s32.totalorder %s34_s19, %s363_s27  ;;  %p369_p5 = scmp.lt.s32.totalorder %s363_s27, %s363_s27 }
   0xd   :  { %p370_p6 = por %p369_p5, %p368_p4 }
   0xf   :  { %p371_p7 = pnand %p370_p6, %p364_p3 }
  0x11   :  { %374 = shalt.err (!%p371_p7)
}
  0x12   :  { %s472_s28 = smov 128   ;;  %s473_s29 = smov 8  }
  0x13   :  { %39 = dma.hbm_to_vmem [thread:$0]  %s584_s1, 512, %s34_s19, [#allocation6], %s472_s28, %s472_s28, %s473_s29  }
  0x14   :  { %s474_s7 = smov [#allocation2]   ;;  %s475_s9 = smov [#allocation7]  }
  0x15   :  { %s21_s8 = sshll.u32 %s474_s7, 4  ;;  %s56_s10 = sshll.u32 %s475_s9, 4  ;;  %s22_s8 = int_to_ptr.vmem [resolvable:$true] %s21_s8  ;;  %s57_s10 = int_to_ptr.vmem [resolvable:$true] %s56_s10 }
  0x16   :  { %s375_s13 = scalar_lea.hbm %s583_s0, 128 }
  0x17   :  { %p376_p8 = scmp.ne.s32.totalorder %s583_s0, %s375_s13  ;;  %p379_p9 = scmp.lt.u32.totalorder %s375_s13, %s583_s0 }
  0x19   :  { %p381_p10 = pnand %p379_p9, %p376_p8 }
  0x1b   :  { %384 = shalt.err (!%p381_p10)
}
  0x1c   :  { %s385_s1 = scalar_lea.vmem %s22_s8, 128  ;;  %p390_p12 = scmp.lt.s32.totalorder %s22_s8, %s22_s8 }
  0x1d   :  { %p386_p11 = scmp.ne.s32.totalorder %s22_s8, %s385_s1  ;;  %p391_p13 = scmp.lt.s32.totalorder %s385_s1, %s385_s1 }
  0x1f   :  { %p392_p0 = por %p391_p13, %p390_p12 }
  0x21   :  { %p393_p1 = pnand %p392_p0, %p386_p11 }
  0x23   :  { %396 = shalt.err (!%p393_p1)
}
  0x24   :  { %24 = dma.hbm_to_vmem [thread:$0]  %s583_s0, 128, %s22_s8, [#allocation3]  }
  0x25   :  { %s397_s22 = scalar_lea.hbm %s586_s3, 512 }
  0x26   :  { %p398_p2 = scmp.ne.s32.totalorder %s586_s3, %s397_s22  ;;  %p401_p3 = scmp.lt.u32.totalorder %s397_s22, %s586_s3 }
  0x28   :  { %p403_p4 = pnand %p401_p3, %p398_p2 }
  0x2a   :  { %406 = shalt.err (!%p403_p4)
}
  0x2b   :  { %s407_s27 = scalar_lea.vmem %s57_s10, 512  ;;  %p412_p6 = scmp.lt.s32.totalorder %s57_s10, %s57_s10 }
  0x2c   :  { %p408_p5 = scmp.ne.s32.totalorder %s57_s10, %s407_s27  ;;  %p413_p7 = scmp.lt.s32.totalorder %s407_s27, %s407_s27 }
  0x2e   :  { %p414_p8 = por %p413_p7, %p412_p6 }
  0x30   :  { %p415_p9 = pnand %p414_p8, %p408_p5 }
  0x32   :  { %418 = shalt.err (!%p415_p9)
}
  0x33   :  { %62 = dma.hbm_to_vmem [thread:$0]  %s586_s3, 512, %s57_s10, [#allocation6], %s472_s28, %s472_s28, %s473_s29  }
  0x34   :  { %463 = dma.done.wait [#allocation3], 128  }
  0x35   :  { %464 = vsyncadd [#allocation3], 4294967168 }
  0x36   :  { %465 = dma.done.wait [#allocation6], 1024  }
  0x37   :  { %466 = vsyncadd [#allocation6], 4294966272  ;;  %v476_v0 = vmov 0.0|0.0   ;;  %vm477_vm0 = vmmov 0   ;;  %v478_v1 = vmov 0.0   ;;  %v91_v2 = vld [vmem:[#allocation5] sm:$0xff] }
  0x38   :  { %329 = vmatprep.subr.bf16.mxu0 %v476_v0  ;;  %315 = vmatprep.mubr.msk.f32.mxu0 %vm477_vm0, %v478_v1  ;;  %v92_v3 = vld [vmem:[#allocation5 + $0x8] sm:$0xff]  ;;  %v93_v4 = vld [vmem:[#allocation5 + $0x10] sm:$0xff]  ;;  %v94_v6 = vld [vmem:[#allocation5 + $0x18] sm:$0xff]  ;;  %vm102_vm1 = vcmask 261120   ;;  %s479_s29 = smov [#allocation9]  }
  0x39   :  { %335 = vmatprep.subr.bf16.mxu1 %v476_v0  ;;  %326 = vmatprep.mubr.msk.f32.mxu1 %vm477_vm0, %v478_v1  ;;  %v330_v5 = vpack.c.bf16 %v92_v3, %v91_v2  ;;  %v333_v7 = vpack.c.bf16 %v94_v6, %v93_v4  ;;  %v90_v8 = vld [vmem:[#allocation2] sm:$0xff]  ;;  %v178_v9 = vld [vmem:[#allocation7] sm:$0xff]  ;;  %v179_v10 = vld [vmem:[#allocation7 + $0x8] sm:$0xff]  ;;  %s277_s6 = sshll.u32 %s479_s29, 4  ;;  %s278_s6 = int_to_ptr.vmem [resolvable:$true] %s277_s6 }
  0x3a   :  { %v336_v11 = vpack.c.bf16 %v179_v10, %v178_v9  ;;  %v180_v12 = vld [vmem:[#allocation7 + $0x10] sm:$0xff]  ;;  %v181_v13 = vld [vmem:[#allocation7 + $0x18] sm:$0xff]  ;;  %s419_s7 = scalar_lea.vmem %s278_s6, 128  ;;  %p424_p11 = scmp.lt.s32.totalorder %s278_s6, %s278_s6 }
  0x3b   :  { %331 = vmatpush3.bf16.msra.mxu0 %v330_v5  ;;  %v339_v14 = vpack.c.bf16 %v181_v13, %v180_v12  ;;  %v294_v15 = vld [vmem:[%s585_s2] ss:$0 sm:$0xff]  ;;  %p420_p10 = scmp.ne.s32.totalorder %s278_s6, %s419_s7  ;;  %p425_p12 = scmp.lt.s32.totalorder %s419_s7, %s419_s7 }
  0x3c   :  { %332 = vmatprep.subr.bf16.mxu0 %v476_v0  ;;  %337 = vmatpush3.bf16.msra.mxu1 %v336_v11 }
  0x3d   :  { %338 = vmatprep.subr.bf16.mxu1 %v476_v0  ;;  %p426_p13 = por %p425_p12, %p424_p11 }
  0x3f   :  { %334 = vmatpush3.bf16.msra.mxu0 %v333_v7  ;;  %p427_p0 = pnand %p426_p13, %p420_p10 }
  0x40   :  { %340 = vmatpush3.bf16.msra.mxu1 %v339_v14 }
  0x42   :  { %316 = vmatmul.mubr.msk.f32.vlgmr.msra.gmra.mrb[0].mxu0 %vm102_vm1, %v90_v8 }
 0x115   :  { %v172_v16 = vpop.f32.mrb[0].mxu0 }
 0x116   :  { %v173_v17 = vadd.f32 %v294_v15, %v172_v16  ;;  %v317_v18 = vpop.f32.mrb[1].mxu0 }
 0x118   :  { %351 = vtanh.f32 %v173_v17 }
 0x122   :  { %v352_v19 = vpop.eup %351 }
 0x123   :  { %177 = vst.msk [vmem:[#allocation9] sm:$0xff] %vm102_vm1, %v352_v19  ;;  %327 = vmatmul.mubr.msk.f32.vlgmr.msra.gmra.mrb[0].mxu1 %vm102_vm1, %v352_v19 }
 0x124   :  { %430 = shalt.err (!%p427_p0)
}
 0x125   :  { %s431_s9 = scalar_lea.hbm %s588_s5, 128 }
 0x126   :  { %p432_p1 = scmp.ne.s32.totalorder %s588_s5, %s431_s9  ;;  %p435_p2 = scmp.lt.u32.totalorder %s431_s9, %s588_s5 }
 0x128   :  { %p437_p3 = pnand %p435_p2, %p432_p1 }
 0x12a   :  { %440 = shalt.err (!%p437_p3)
}
 0x12b   :  { %280 = dma.vmem_to_hbm [thread:$0]  %s278_s6, 128, %s588_s5, [#allocation10]  }
 0x12c   :  { %s480_s16 = smov [#allocation8]  }
 0x12d   :  { %s264_s17 = sshll.u32 %s480_s16, 4  ;;  %s265_s17 = int_to_ptr.vmem [resolvable:$true] %s264_s17 }
 0x12e   :  { %s441_s1 = scalar_lea.vmem %s265_s17, 128  ;;  %p446_p5 = scmp.lt.s32.totalorder %s265_s17, %s265_s17 }
 0x12f   :  { %p442_p4 = scmp.ne.s32.totalorder %s265_s17, %s441_s1  ;;  %p447_p6 = scmp.lt.s32.totalorder %s441_s1, %s441_s1 }
 0x131   :  { %p448_p7 = por %p447_p6, %p446_p5 }
 0x133   :  { %p449_p8 = pnand %p448_p7, %p442_p4 }
 0x1f6   :  { %v251_v20 = vpop.f32.mrb[0].mxu1 }
 0x1f7   :  { %v328_v21 = vpop.f32.mrb[1].mxu1  ;;  %257 = vst [vmem:[#allocation8] sm:$0xff] %v251_v20 }
 0x1f8   :  { %452 = shalt.err (!%p449_p8)
}
 0x1f9   :  { %s453_s20 = scalar_lea.hbm %s587_s4, 128 }
 0x1fa   :  { %p454_p9 = scmp.ne.s32.totalorder %s587_s4, %s453_s20  ;;  %p457_p10 = scmp.lt.u32.totalorder %s453_s20, %s587_s4 }
 0x1fc   :  { %p459_p11 = pnand %p457_p10, %p454_p9 }
 0x1fe   :  { %462 = shalt.err (!%p459_p11)
}
 0x1ff   :  { %267 = dma.vmem_to_hbm [thread:$0]  %s265_s17, 128, %s587_s4, [#allocation4]  }
 0x200   :  { %467 = dma.done.wait [#allocation4], 128  }
 0x201   :  { %468 = vsyncadd [#allocation4], 4294967168 }
 0x202   :  { %469 = dma.done.wait [#allocation10], 128  }
 0x203   :  { %470 = vsyncadd [#allocation10], 4294967168 }
 0x204   :  { %287 = vsyncpa [#allocation3], 1 }
 0x205   :  { %288 = vsyncpa [#allocation6], 1 }
 0x206   :  { %289 = vsyncpa [#allocation4], 1 }
 0x207   :  { %290 = vsyncpa [#allocation10], 1 }

</bundles_post_ra>
